<compile_context>
chip_gen: v7x
topology: tpu7x:2x2x1
jax: 0.10.0
libtpu: 0.0.40
codegen_flags: <defaults>
</compile_context>

<pallas_src>
import functools

import jax
import jax.numpy as jnp
from jax.experimental import pallas as pl
from jax.experimental.pallas import tpu as pltpu


def _round_up(x, m):
    return ((x + m - 1) // m) * m


def _encoder_kernel(x_ref, w_ref, b_ref, o_ref, acc_ref, *,
                    no_imgnorm, use_abs, eps):
    # x_ref:   (TB, TK)      VMEM, native dtype (f32 / bf16)
    # w_ref:   (TK, embed)   VMEM, native dtype
    # b_ref:   (1, embed)    VMEM
    # o_ref:   (TB, embed)   VMEM, written only on the last K step
    # acc_ref: (TB, embed)   VMEM f32 accumulator scratch
    k = pl.program_id(1)

    @pl.when(k == 0)
    def _init():
        acc_ref[...] = jnp.zeros_like(acc_ref)

    # MXU matmul in native dtype; f32 accumulation on the MXU.
    acc_ref[...] += jnp.dot(x_ref[...], w_ref[...],
                            preferred_element_type=jnp.float32)

    @pl.when(k == pl.num_programs(1) - 1)
    def _finalize():
        feats = acc_ref[...] + b_ref[...].astype(jnp.float32)
        if not no_imgnorm:
            # l2norm: X / (sqrt(sum(X^2, axis=-1, keepdims)) + eps)
            sq_sum = jnp.sum(feats * feats, axis=-1, keepdims=True)
            norm = jnp.sqrt(sq_sum) + eps
            inv = pl.reciprocal(norm, approx=True)   # EUP slot
            inv = inv * (2.0 - norm * inv)           # one NR step -> ~f32 precision
            feats = feats * inv
        if use_abs:
            feats = jnp.abs(feats)
        o_ref[...] = feats.astype(o_ref.dtype)


def encoder_image_precomp(images, weight_t, bias, *, no_imgnorm=False,
                          use_abs=False, eps=1e-12, tile_b=256, tile_k=512):
    """images: (B, img_dim); weight_t: (img_dim, embed) == fc.weight.T; bias: (embed,)."""
    B, img_dim = images.shape
    k_w, embed = weight_t.shape
    assert k_w == img_dim, "weight_t must be (img_dim, embed)"
    out_dtype = images.dtype

    # --- batch (M) tiling: large tiles to fill the MXU; ragged batch padded ---
    tb = max(8, min(int(tile_b), _round_up(B, 8)))
    b_pad = _round_up(B, tb)

    # --- reduction (K = img_dim) tiling: keeps weight tiles VMEM-friendly ---
    tk = min(_round_up(int(tile_k), 128), _round_up(img_dim, 128))
    k_pad = _round_up(img_dim, tk)

    x = images
    if b_pad != B or k_pad != img_dim:
        x = jnp.pad(x, ((0, b_pad - B), (0, k_pad - img_dim)))
    w = weight_t
    if k_pad != img_dim:
        w = jnp.pad(w, ((0, k_pad - img_dim), (0, 0)))
    b2 = bias.reshape(1, embed)

    grid = (b_pad // tb, k_pad // tk)

    # Explicit VMEM budget: double-buffered input/output tiles + f32 accumulator.
    out_isz = jnp.dtype(out_dtype).itemsize
    need = (2 * tb * tk * x.dtype.itemsize
            + 2 * tk * embed * w.dtype.itemsize
            + 2 * embed * b2.dtype.itemsize
            + 2 * tb * embed * out_isz
            + tb * embed * 4)
    vmem_limit = max(int(need * 1.25) + (2 << 20), 32 << 20)

    cost = pl.CostEstimate(
        flops=2 * b_pad * k_pad * embed,
        transcendentals=0 if no_imgnorm else b_pad,
        bytes_accessed=(x.size * x.dtype.itemsize
                        + grid[0] * w.size * w.dtype.itemsize
                        + b2.size * b2.dtype.itemsize
                        + b_pad * embed * out_isz),
    )

    kernel = functools.partial(_encoder_kernel, no_imgnorm=no_imgnorm,
                               use_abs=use_abs, eps=eps)

    out = pl.pallas_call(
        kernel,
        out_shape=jax.ShapeDtypeStruct((b_pad, embed), out_dtype),
        grid_spec=pltpu.PrefetchScalarGridSpec(
            num_scalar_prefetch=0,
            grid=grid,
            in_specs=[
                pl.BlockSpec((tb, tk), lambda i, k: (i, k)),
                pl.BlockSpec((tk, embed), lambda i, k: (k, 0)),
                pl.BlockSpec((1, embed), lambda i, k: (0, 0)),
            ],
            out_specs=pl.BlockSpec((tb, embed), lambda i, k: (i, 0)),
            scratch_shapes=[pltpu.VMEM((tb, embed), jnp.float32)],
        ),
        compiler_params=pltpu.CompilerParams(
            dimension_semantics=("parallel", "arbitrary"),
            vmem_limit_bytes=vmem_limit),
        cost_estimate=cost,
    )(x, w, b2)

    return out[:B]


def _reference(images, weight_t, bias, no_imgnorm=False, use_abs=False,
               eps=1e-12):
    feats = images.astype(jnp.float32) @ weight_t.astype(jnp.float32) \
        + bias.astype(jnp.float32)
    if not no_imgnorm:
        norm = jnp.sqrt(jnp.sum(feats ** 2, axis=-1, keepdims=True)) + eps
        feats = feats / norm
    if use_abs:
        feats = jnp.abs(feats)
    return feats.astype(images.dtype)


if __name__ == "__main__":
    # Small shapes that also exercise ragged-batch and ragged-img_dim padding.
    img_dim = 200       # not a multiple of 128
    embed_size = 128
    batch = 20          # not a multiple of 8

    key = jax.random.PRNGKey(0)
    k_img, k_w, k_b = jax.random.split(key, 3)

    # Xavier-uniform init exactly as in init_weights(): r = sqrt(6)/sqrt(in+out).
    r = jnp.sqrt(6.0) / jnp.sqrt(float(img_dim + embed_size))
    # torch fc.weight is (embed, img_dim); we carry its transpose (img_dim, embed).
    weight_t = jax.random.uniform(k_w, (img_dim, embed_size),
                                  dtype=jnp.float32, minval=-r, maxval=r)
    # Small random bias (module inits to 0, but this exercises the bias path).
    bias = 0.01 * jax.random.normal(k_b, (embed_size,), dtype=jnp.float32)
    images = jax.random.normal(k_img, (batch, img_dim), dtype=jnp.float32)

    for use_abs, no_imgnorm in [(False, False), (True, True)]:
        out = encoder_image_precomp(images, weight_t, bias,
                                    no_imgnorm=no_imgnorm, use_abs=use_abs)
        out = jax.block_until_ready(out)
        ref = _reference(images, weight_t, bias,
                         no_imgnorm=no_imgnorm, use_abs=use_abs)
        assert out.shape == (batch, embed_size)
        assert jnp.allclose(out, ref, atol=1e-4, rtol=1e-4), \
            f"mismatch vs reference (use_abs={use_abs}, no_imgnorm={no_imgnorm})"

    print("KERNEL_OK")
</pallas_src>

<mosaic_0001>
module attributes {stable_mosaic.version = 11 : i64} {
  func.func @_encoder_kernel(%arg0: i32, %arg1: i32, %arg2: memref<24x256xf32, #tpu.memory_space<vmem>>, %arg3: memref<256x128xf32, #tpu.memory_space<vmem>>, %arg4: memref<1x128xf32, #tpu.memory_space<vmem>>, %arg5: memref<24x128xf32, #tpu.memory_space<vmem>>, %arg6: memref<24x128xf32, #tpu.memory_space<vmem>>) attributes {dimension_semantics = [#tpu.dimension_semantics<parallel>, #tpu.dimension_semantics<arbitrary>], iteration_bounds = array<i64: 1, 1>, scalar_prefetch = 0 : i64, scratch_operands = 1 : i64, tpu.core_type = #tpu.core_type<tc>, window_params = [{transform_indices = @transform_0, window_bounds = array<i64: 24, 256>}, {transform_indices = @transform_1, window_bounds = array<i64: 256, 128>}, {pipeline_mode = #tpu.pipeline_mode<synchronous>, transform_indices = @transform_2, window_bounds = array<i64: 1, 128>}, {transform_indices = @transform_3, window_bounds = array<i64: 24, 128>}]} {
    %c0_i32 = arith.constant 0 : i32
    %0 = arith.cmpi eq, %arg1, %c0_i32 : i32
    %1 = arith.extui %0 : i1 to i32
    %c0_i32_0 = arith.constant 0 : i32
    %2 = arith.cmpi ne, %1, %c0_i32_0 : i32
    scf.if %2 {
      %cst_10 = arith.constant 0.000000e+00 : f32
      %12 = vector.broadcast %cst_10 : f32 to vector<24x128xf32>
      %c0_11 = arith.constant 0 : index
      %c0_12 = arith.constant 0 : index
      %13 = vector.load %arg6[%c0_11, %c0_12] : memref<24x128xf32, #tpu.memory_space<vmem>>, vector<24x128xf32>
      tpu.vector_store %arg6[%c0_11, %c0_12], %12 {strides = array<i32>} : memref<24x128xf32, #tpu.memory_space<vmem>>, vector<24x128xf32>,
    } else {
    }
    %c0 = arith.constant 0 : index
    %c0_1 = arith.constant 0 : index
    %3 = vector.load %arg6[%c0, %c0_1] : memref<24x128xf32, #tpu.memory_space<vmem>>, vector<24x128xf32>
    %c0_2 = arith.constant 0 : index
    %c0_3 = arith.constant 0 : index
    %4 = vector.load %arg2[%c0_2, %c0_3] : memref<24x256xf32, #tpu.memory_space<vmem>>, vector<24x256xf32>
    %c0_4 = arith.constant 0 : index
    %c0_5 = arith.constant 0 : index
    %5 = vector.load %arg3[%c0_4, %c0_5] : memref<256x128xf32, #tpu.memory_space<vmem>>, vector<256x128xf32>
    %cst = arith.constant dense<0.000000e+00> : vector<24x128xf32>
    %6 = tpu.matmul %4, %5, %cst {dimension_numbers = #tpu.dot_dimension_numbers<[1], [0], [0], [1], [0, 0, 1, 1], [], []>} : vector<24x256xf32>, vector<256x128xf32>, vector<24x128xf32> -> vector<24x128xf32>
    %7 = arith.addf %3, %6 : vector<24x128xf32>
    %c0_6 = arith.constant 0 : index
    %c0_7 = arith.constant 0 : index
    %8 = vector.load %arg6[%c0_6, %c0_7] : memref<24x128xf32, #tpu.memory_space<vmem>>, vector<24x128xf32>
    tpu.vector_store %arg6[%c0_6, %c0_7], %7 {strides = array<i32>} : memref<24x128xf32, #tpu.memory_space<vmem>>, vector<24x128xf32>,
    %c0_i32_8 = arith.constant 0 : i32
    %9 = arith.cmpi eq, %arg1, %c0_i32_8 : i32
    %10 = arith.extui %9 : i1 to i32
    %c0_i32_9 = arith.constant 0 : i32
    %11 = arith.cmpi ne, %10, %c0_i32_9 : i32
    scf.if %11 {
      %c0_10 = arith.constant 0 : index
      %c0_11 = arith.constant 0 : index
      %12 = vector.load %arg6[%c0_10, %c0_11] : memref<24x128xf32, #tpu.memory_space<vmem>>, vector<24x128xf32>
      %c0_12 = arith.constant 0 : index
      %c0_13 = arith.constant 0 : index
      %13 = vector.load %arg4[%c0_12, %c0_13] : memref<1x128xf32, #tpu.memory_space<vmem>>, vector<1x128xf32>
      %14 = vector.broadcast %13 : vector<1x128xf32> to vector<24x128xf32>
      %15 = arith.addf %12, %14 : vector<24x128xf32>
      %16 = arith.mulf %15, %15 : vector<24x128xf32>
      %cst_14 = arith.constant dense<0.000000e+00> : vector<24xf32>
      %17 = vector.multi_reduction <add>, %16, %cst_14 [1] : vector<24x128xf32> to vector<24xf32>
      %18 = vector.shape_cast %17 : vector<24xf32> to vector<24x1xf32>
      %19 = math.sqrt %18 : vector<24x1xf32>
      %cst_15 = arith.constant 9.99999996E-13 : f32
      %20 = vector.broadcast %cst_15 : f32 to vector<24x1xf32>
      %21 = arith.addf %19, %20 : vector<24x1xf32>
      %22 = tpu.reciprocal %21 {approx = true} : vector<24x1xf32> -> vector<24x1xf32>
      %23 = arith.mulf %21, %22 : vector<24x1xf32>
      %cst_16 = arith.constant 2.000000e+00 : f32
      %24 = vector.broadcast %cst_16 : f32 to vector<24x1xf32>
      %25 = arith.subf %24, %23 : vector<24x1xf32>
      %26 = arith.mulf %22, %25 : vector<24x1xf32>
      %27 = vector.broadcast %26 : vector<24x1xf32> to vector<24x128xf32>
      %28 = arith.mulf %15, %27 : vector<24x128xf32>
      %c0_17 = arith.constant 0 : index
      %c0_18 = arith.constant 0 : index
      %29 = vector.load %arg5[%c0_17, %c0_18] : memref<24x128xf32, #tpu.memory_space<vmem>>, vector<24x128xf32>
      tpu.vector_store %arg5[%c0_17, %c0_18], %28 {strides = array<i32>} : memref<24x128xf32, #tpu.memory_space<vmem>>, vector<24x128xf32>,
    } else {
    }
    return
  }
  func.func @transform_0(%arg0: i32, %arg1: i32) -> (i32, i32) {
    %c0_i32 = arith.constant 0 : i32
    return %arg0, %arg1 : i32, i32
  }
  func.func @transform_1(%arg0: i32, %arg1: i32) -> (i32, i32) {
    %c0_i32 = arith.constant 0 : i32
    %c0_i32_0 = arith.constant 0 : i32
    return %arg1, %c0_i32 : i32, i32
  }
  func.func @transform_2(%arg0: i32, %arg1: i32) -> (i32, i32) {
    %c0_i32 = arith.constant 0 : i32
    %c0_i32_0 = arith.constant 0 : i32
    %c0_i32_1 = arith.constant 0 : i32
    return %c0_i32, %c0_i32_0 : i32, i32
  }
  func.func @transform_3(%arg0: i32, %arg1: i32) -> (i32, i32) {
    %c0_i32 = arith.constant 0 : i32
    %c0_i32_0 = arith.constant 0 : i32
    return %arg0, %c0_i32 : i32, i32
  }
}

</mosaic_0001>

<bundles_post_ra>
// kernel: tpu_custom_call.1
= control target key start
LH: loop header
LB: loop body
LE: loop exit
PB: predicated region body
PF: predicated region fallthrough
CT: control target
= control target key end

     0   :  { %8 = vsyncpa [#allocation4], 0  ;;  %s515_s0 = inlined_call_operand.hbm [shape: f32[24,256], index: 0, kind: input, shape index: {}]   ;;  %s516_s1 = inlined_call_operand.hbm [shape: f32[256,128], index: 1, kind: input, shape index: {}]   ;;  %s517_s2 = inlined_call_operand.vmem [shape: f32[1,128], index: 2, kind: input, shape index: {}]   ;;  %s518_s3 = inlined_call_operand.hbm [shape: f32[24,128], index: 3, kind: output, shape index: {}]  }
   0x1   :  { %9 = vsyncpa [#allocation7], 0 }
   0x2   :  { %10 = vsyncpa [#allocation5], 0  ;;  %s443_s12 = smov [#allocation3]   ;;  %s371_s16 = scalar_lea.hbm %s515_s0, 768 }
   0x3   :  { %s16_s13 = sshll.u32 %s443_s12, 4  ;;  %p372_p0 = scmp.ne.s32.totalorder %s515_s0, %s371_s16  ;;  %s17_s13 = int_to_ptr.vmem [resolvable:$true] %s16_s13 }
   0x4   :  { %p375_p1 = scmp.lt.u32.totalorder %s371_s16, %s515_s0 }
   0x6   :  { %p377_p2 = pnand %p375_p1, %p372_p0 }
   0x8   :  { %380 = shalt.err (!%p377_p2)
}
   0x9   :  { %s381_s21 = scalar_lea.vmem %s17_s13, 768  ;;  %p386_p4 = scmp.lt.s32.totalorder %s17_s13, %s17_s13 }
   0xa   :  { %p382_p3 = scmp.ne.s32.totalorder %s17_s13, %s381_s21  ;;  %p387_p5 = scmp.lt.s32.totalorder %s381_s21, %s381_s21 }
   0xc   :  { %p388_p6 = por %p387_p5, %p386_p4 }
   0xe   :  { %p389_p7 = pnand %p388_p6, %p382_p3 }
  0x10   :  { %392 = shalt.err (!%p389_p7)
}
  0x11   :  { %s444_s22 = smov 256   ;;  %s445_s23 = smov 16  }
  0x12   :  { %22 = dma.hbm_to_vmem [thread:$0]  %s515_s0, 768, %s17_s13, [#allocation4], %s444_s22, %s444_s22, %s445_s23  }
  0x13   :  { %s446_s26 = smov [#allocation6]   ;;  %s393_s30 = scalar_lea.hbm %s516_s1, 4096 }
  0x14   :  { %s28_s27 = sshll.u32 %s446_s26, 4  ;;  %p394_p8 = scmp.ne.s32.totalorder %s516_s1, %s393_s30  ;;  %s29_s27 = int_to_ptr.vmem [resolvable:$true] %s28_s27 }
  0x15   :  { %p397_p9 = scmp.lt.u32.totalorder %s393_s30, %s516_s1 }
  0x17   :  { %p399_p10 = pnand %p397_p9, %p394_p8 }
  0x19   :  { %402 = shalt.err (!%p399_p10)
}
  0x1a   :  { %s403_s8 = scalar_lea.vmem %s29_s27, 4096  ;;  %p408_p12 = scmp.lt.s32.totalorder %s29_s27, %s29_s27 }
  0x1b   :  { %p404_p11 = scmp.ne.s32.totalorder %s29_s27, %s403_s8  ;;  %p409_p13 = scmp.lt.s32.totalorder %s403_s8, %s403_s8 }
  0x1d   :  { %p410_p0 = por %p409_p13, %p408_p12 }
  0x1f   :  { %p411_p1 = pnand %p410_p0, %p404_p11 }
  0x21   :  { %414 = shalt.err (!%p411_p1)
}
  0x22   :  { %s447_s0 = smov 128   ;;  %s448_s9 = smov 8  }
  0x23   :  { %34 = dma.hbm_to_vmem [thread:$0]  %s516_s1, 4096, %s29_s27, [#allocation7], %s447_s0, %s447_s0, %s448_s9  }
  0x24   :  { %437 = dma.done.wait [#allocation4], 768  }
  0x25   :  { %438 = vsyncadd [#allocation4], 4294966528 }
  0x26   :  { %439 = dma.done.wait [#allocation7], 4096  }
  0x27   :  { %440 = vsyncadd [#allocation7], 4294963200  ;;  %v75_v0 = vld [vmem:[#allocation6 + $0x80] sm:$0xff]  ;;  %v76_v1 = vld [vmem:[#allocation6 + $0x88] sm:$0xff] }
  0x28   :  { %v59_v2 = vld [vmem:[#allocation6] sm:$0xff]  ;;  %v304_v3 = vpack.c.bf16 %v76_v1, %v75_v0  ;;  %v60_v4 = vld [vmem:[#allocation6 + $0x8] sm:$0xff]  ;;  %v77_v5 = vld [vmem:[#allocation6 + $0x90] sm:$0xff] }
  0x29   :  { %v78_v6 = vld [vmem:[#allocation6 + $0x98] sm:$0xff]  ;;  %v306_v7 = vpack.c.bf16 %v60_v4, %v59_v2  ;;  %v61_v9 = vld [vmem:[#allocation6 + $0x10] sm:$0xff]  ;;  %v79_v11 = vld [vmem:[#allocation6 + $0xa0] sm:$0xff] }
  0x2a   :  { %v308_v8 = vpack.c.bf16 %v78_v6, %v77_v5  ;;  %v62_v10 = vld [vmem:[#allocation6 + $0x18] sm:$0xff]  ;;  %305 = vmatprep.subr.bf16.mxu0 %v304_v3  ;;  %336 = vmatprep.subr.bf16.mxu1 %v304_v3  ;;  %v80_v12 = vld [vmem:[#allocation6 + $0xa8] sm:$0xff]  ;;  %v63_v15 = vld [vmem:[#allocation6 + $0x20] sm:$0xff] }
  0x2b   :  { %307 = vmatpush3.bf16.msra.mxu0 %v306_v7  ;;  %344 = vmatpush3.bf16.msra.mxu1 %v306_v7  ;;  %v310_v13 = vpack.c.bf16 %v62_v10, %v61_v9  ;;  %v312_v14 = vpack.c.bf16 %v80_v12, %v79_v11  ;;  %v64_v16 = vld [vmem:[#allocation6 + $0x28] sm:$0xff]  ;;  %v81_v17 = vld [vmem:[#allocation6 + $0xb0] sm:$0xff]  ;;  %v82_v18 = vld [vmem:[#allocation6 + $0xb8] sm:$0xff] }
  0x2c   :  { %309 = vmatprep.subr.bf16.mxu0 %v308_v8  ;;  %337 = vmatprep.subr.bf16.mxu1 %v308_v8  ;;  %v314_v19 = vpack.c.bf16 %v64_v16, %v63_v15  ;;  %v316_v20 = vpack.c.bf16 %v82_v18, %v81_v17  ;;  %v65_v21 = vld [vmem:[#allocation6 + $0x30] sm:$0xff]  ;;  %v66_v22 = vld [vmem:[#allocation6 + $0x38] sm:$0xff]  ;;  %v83_v23 = vld [vmem:[#allocation6 + $0xc0] sm:$0xff] }
  0x2d   :  { %v84_v24 = vld [vmem:[#allocation6 + $0xc8] sm:$0xff]  ;;  %v54_v25 = vld [vmem:[#allocation3 + $0x8] sm:$0xff]  ;;  %v318_v27 = vpack.c.bf16 %v66_v22, %v65_v21  ;;  %v67_v29 = vld [vmem:[#allocation6 + $0x40] sm:$0xff] }
  0x2e   :  { %155 = vmatprep.mubr.f32.mxu0 %v54_v25  ;;  %v56_v26 = vld [vmem:[#allocation3 + $0x18] sm:$0xff]  ;;  %v320_v28 = vpack.c.bf16 %v84_v24, %v83_v23  ;;  %v85_v31 = vld [vmem:[#allocation6 + $0xd0] sm:$0xff]  ;;  %v86_v32 = vld [vmem:[#allocation6 + $0xd8] sm:$0xff] }
  0x2f   :  { %311 = vmatpush3.bf16.msra.mxu0 %v310_v13  ;;  %345 = vmatpush3.bf16.msra.mxu1 %v310_v13  ;;  %v68_v30 = vld [vmem:[#allocation6 + $0x48] sm:$0xff]  ;;  %v324_v34 = vpack.c.bf16 %v86_v32, %v85_v31  ;;  %v69_v35 = vld [vmem:[#allocation6 + $0x50] sm:$0xff]  ;;  %v70_v36 = vld [vmem:[#allocation6 + $0x58] sm:$0xff] }
  0x30   :  { %313 = vmatprep.subr.bf16.mxu0 %v312_v14  ;;  %338 = vmatprep.subr.bf16.mxu1 %v312_v14  ;;  %v322_v33 = vpack.c.bf16 %v68_v30, %v67_v29  ;;  %v87_v37 = vld [vmem:[#allocation6 + $0xe0] sm:$0xff]  ;;  %v88_v38 = vld [vmem:[#allocation6 + $0xe8] sm:$0xff]  ;;  %v326_v39 = vpack.c.bf16 %v70_v36, %v69_v35  ;;  %v89_v43 = vld [vmem:[#allocation6 + $0xf0] sm:$0xff] }
  0x31   :  { %160 = vmatprep.mubr.f32.mxu1 %v56_v26  ;;  %v328_v40 = vpack.c.bf16 %v88_v38, %v87_v37  ;;  %v71_v41 = vld [vmem:[#allocation6 + $0x60] sm:$0xff]  ;;  %v72_v42 = vld [vmem:[#allocation6 + $0x68] sm:$0xff]  ;;  %v90_v44 = vld [vmem:[#allocation6 + $0xf8] sm:$0xff] }
  0x32   :  { %v330_v45 = vpack.c.bf16 %v72_v42, %v71_v41  ;;  %v332_v46 = vpack.c.bf16 %v90_v44, %v89_v43  ;;  %v73_v47 = vld [vmem:[#allocation6 + $0x70] sm:$0xff]  ;;  %v74_v48 = vld [vmem:[#allocation6 + $0x78] sm:$0xff]  ;;  %v55_v51 = vld [vmem:[#allocation3 + $0x10] sm:$0xff] }
  0x33   :  { %315 = vmatpush3.bf16.msra.mxu0 %v314_v19  ;;  %346 = vmatpush3.bf16.msra.mxu1 %v314_v19  ;;  %v334_v49 = vpack.c.bf16 %v74_v48, %v73_v47  ;;  %v53_v50 = vld [vmem:[#allocation3] sm:$0xff]  ;;  %v58_v52 = vld [vmem:[#allocation3 + $0x28] sm:$0xff] }
  0x34   :  { %317 = vmatprep.subr.bf16.mxu0 %v316_v20  ;;  %339 = vmatprep.subr.bf16.mxu1 %v316_v20  ;;  %v57_v53 = vld [vmem:[#allocation3 + $0x20] sm:$0xff] }
  0x35   :  { %v262_v58 = vld [vmem:[%s517_s2] ss:$0 sm:$0xff]  ;;  %s449_s2 = smov [#allocation8]  }
  0x36   :  { %s249_s13 = sshll.u32 %s449_s2, 4  ;;  %s250_s13 = int_to_ptr.vmem [resolvable:$true] %s249_s13 }
  0x37   :  { %319 = vmatpush3.bf16.msra.mxu0 %v318_v27  ;;  %347 = vmatpush3.bf16.msra.mxu1 %v318_v27  ;;  %s415_s14 = scalar_lea.vmem %s250_s13, 384  ;;  %p420_p3 = scmp.lt.s32.totalorder %s250_s13, %s250_s13 }
  0x38   :  { %321 = vmatprep.subr.bf16.mxu0 %v320_v28  ;;  %340 = vmatprep.subr.bf16.mxu1 %v320_v28  ;;  %p416_p2 = scmp.ne.s32.totalorder %s250_s13, %s415_s14  ;;  %p421_p4 = scmp.lt.s32.totalorder %s415_s14, %s415_s14 }
  0x3a   :  { %p422_p5 = por %p421_p4, %p420_p3 }
  0x3b   :  { %323 = vmatpush3.bf16.msra.mxu0 %v322_v33  ;;  %348 = vmatpush3.bf16.msra.mxu1 %v322_v33 }
  0x3c   :  { %325 = vmatprep.subr.bf16.mxu0 %v324_v34  ;;  %341 = vmatprep.subr.bf16.mxu1 %v324_v34  ;;  %p423_p6 = pnand %p422_p5, %p416_p2 }
  0x3f   :  { %327 = vmatpush3.bf16.msra.mxu0 %v326_v39  ;;  %349 = vmatpush3.bf16.msra.mxu1 %v326_v39 }
  0x40   :  { %329 = vmatprep.subr.bf16.mxu0 %v328_v40  ;;  %342 = vmatprep.subr.bf16.mxu1 %v328_v40 }
  0x43   :  { %331 = vmatpush3.bf16.msra.mxu0 %v330_v45  ;;  %350 = vmatpush3.bf16.msra.mxu1 %v330_v45 }
  0x44   :  { %333 = vmatprep.subr.bf16.mxu0 %v332_v46  ;;  %343 = vmatprep.subr.bf16.mxu1 %v332_v46 }
  0x47   :  { %335 = vmatpush3.bf16.msra.mxu0 %v334_v49  ;;  %351 = vmatpush3.bf16.msra.mxu1 %v334_v49 }
  0x4a   :  { %156 = vmatmul.mubr.f32.vlgmr.msra.gmra.mrb[0].mxu0 %v53_v50  ;;  %161 = vmatmul.mubr.f32.vlgmr.msra.gmra.mrb[0].mxu1 %v55_v51 }
  0x4b   :  { %165 = vmatprep.mubr.f32.mxu1 %v58_v52 }
  0x4e   :  { %166 = vmatmul.mubr.f32.gmra.mrb[2].mxu1 %v57_v53 }
 0x11d   :  { %v295_v54 = vpop.f32.mrb[0].mxu0  ;;  %v298_v55 = vpop.f32.mrb[0].mxu1 }
 0x11e   :  { %v296_v56 = vpop.f32.mrb[1].mxu0  ;;  %v299_v57 = vpop.f32.mrb[1].mxu1 }
 0x11f   :  { %v297_v59 = vadd.f32 %v296_v56, %v295_v54  ;;  %v300_v60 = vadd.f32 %v299_v57, %v298_v55 }
 0x121   :  { %v301_v61 = vpop.f32.mrb[2].mxu1  ;;  %v190_v62 = vadd.f32 %v297_v59, %v262_v58  ;;  %v191_v0 = vadd.f32 %v300_v60, %v262_v58 }
 0x122   :  { %v302_v63 = vpop.f32.mrb[3].mxu1 }
 0x123   :  { %v303_v1 = vadd.f32 %v302_v63, %v301_v61  ;;  %v193_v2 = vmul.f32 %v190_v62, %v190_v62  ;;  %v194_v5 = vmul.f32 %v191_v0, %v191_v0 }
 0x125   :  { %196 = vadd.xlane.f32.xlu0 %v193_v2  ;;  %v192_v3 = vadd.f32 %v303_v1, %v262_v58 }
 0x127   :  { %v195_v4 = vmul.f32 %v192_v3, %v192_v3 }
 0x129   :  { %200 = vadd.xlane.f32.xlu1 %v195_v4  ;;  %198 = vadd.xlane.f32.xlu0 %v194_v5 }
 0x1b2   :  { %v197_v6 = vpop.xlane.xlu0 %196 }
 0x1b3   :  { %359 = vrsqrt.f32 %v197_v6  ;;  %vm204_vm0 = vcmp.eq.f32.partialorder %v197_v6, inf  ;;  %v207_v11 = vand.u32 2147483648, %v197_v6  ;;  %vm206_vm1 = vcmp.eq.f32.partialorder %v197_v6, 0.0 }
 0x1b6   :  { %v201_v7 = vpop.xlane.xlu1 %200  ;;  %v199_v8 = vpop.xlane.xlu0 %198 }
 0x1b7   :  { %361 = vrsqrt.f32 %v201_v7  ;;  %vm218_vm2 = vcmp.eq.f32.partialorder %v201_v7, inf  ;;  %vm220_vm3 = vcmp.eq.f32.partialorder %v201_v7, 0.0  ;;  %v221_v18 = vand.u32 2147483648, %v201_v7 }
 0x1b8   :  { %363 = vrsqrt.f32 %v199_v8  ;;  %vm211_vm4 = vcmp.eq.f32.partialorder %v199_v8, inf  ;;  %v214_v21 = vand.u32 2147483648, %v199_v8  ;;  %vm213_vm5 = vcmp.eq.f32.partialorder %v199_v8, 0.0 }
 0x1bd   :  { %v360_v9 = vpop.eup %359 }
 0x1be   :  { %v203_v10 = vmul.f32 %v360_v9, %v197_v6 }
 0x1c0   :  { %v205_v12 = vsel %vm204_vm0, %v197_v6, %v203_v10 }
 0x1c1   :  { %v362_v13 = vpop.eup %361  ;;  %v208_v14 = vsel %vm206_vm1, %v207_v11, %v205_v12 }
 0x1c2   :  { %v364_v15 = vpop.eup %363  ;;  %v217_v16 = vmul.f32 %v362_v13, %v201_v7  ;;  %v223_v17 = vadd.f32 1e-12, %v208_v14 }
 0x1c3   :  { %v210_v19 = vmul.f32 %v364_v15, %v199_v8 }
 0x1c4   :  { %v219_v20 = vsel %vm218_vm2, %v201_v7, %v217_v16  ;;  %365 = vrcp.f32 %v223_v17 }
 0x1c5   :  { %v222_v22 = vsel %vm220_vm3, %v221_v18, %v219_v20  ;;  %v212_v23 = vsel %vm211_vm4, %v199_v8, %v210_v19 }
 0x1c6   :  { %v225_v24 = vadd.f32 1e-12, %v222_v22  ;;  %v215_v25 = vsel %vm213_vm5, %v214_v21, %v212_v23 }
 0x1c7   :  { %v224_v26 = vadd.f32 1e-12, %v215_v25 }
 0x1c8   :  { %367 = vrcp.f32 %v225_v24 }
 0x1c9   :  { %369 = vrcp.f32 %v224_v26 }
 0x1ce   :  { %v366_v27 = vpop.eup %365 }
 0x1cf   :  { %v229_v28 = vmul.f32 %v366_v27, %v223_v17 }
 0x1d1   :  { %v232_v29 = vsub.f32 2.0, %v229_v28 }
 0x1d2   :  { %v368_v30 = vpop.eup %367 }
 0x1d3   :  { %v370_v31 = vpop.eup %369  ;;  %v231_v32 = vmul.f32 %v368_v30, %v225_v24  ;;  %v235_v33 = vmul.f32 %v366_v27, %v232_v29 }
 0x1d4   :  { %v230_v34 = vmul.f32 %v370_v31, %v224_v26 }
 0x1d5   :  { %v234_v35 = vsub.f32 2.0, %v231_v32  ;;  %v238_v36 = vmul.f32 %v235_v33, %v190_v62 }
 0x1d6   :  { %v233_v37 = vsub.f32 2.0, %v230_v34 }
 0x1d7   :  { %v237_v38 = vmul.f32 %v368_v30, %v234_v35  ;;  %241 = vst [vmem:[#allocation8] sm:$0xff] %v238_v36 }
 0x1d8   :  { %v236_v39 = vmul.f32 %v370_v31, %v233_v37 }
 0x1d9   :  { %v240_v40 = vmul.f32 %v237_v38, %v192_v3 }
 0x1da   :  { %v239_v41 = vmul.f32 %v236_v39, %v191_v0 }
 0x1db   :  { %243 = vst [vmem:[#allocation8 + $0x10] sm:$0xff] %v240_v40 }
 0x1dc   :  { %242 = vst [vmem:[#allocation8 + $0x8] sm:$0xff] %v239_v41 }
 0x1dd   :  { %426 = shalt.err (!%p423_p6)
}
 0x1de   :  { %s427_s17 = scalar_lea.hbm %s518_s3, 384 }
 0x1df   :  { %p428_p7 = scmp.ne.s32.totalorder %s518_s3, %s427_s17  ;;  %p431_p8 = scmp.lt.u32.totalorder %s427_s17, %s518_s3 }
 0x1e1   :  { %p433_p9 = pnand %p431_p8, %p428_p7 }
 0x1e3   :  { %436 = shalt.err (!%p433_p9)
}
 0x1e4   :  { %255 = dma.vmem_to_hbm [thread:$0]  %s250_s13, 384, %s518_s3, [#allocation5], %s447_s0, %s447_s0, %s448_s9  }
 0x1e5   :  { %441 = dma.done.wait [#allocation5], 384  }
 0x1e6   :  { %442 = vsyncadd [#allocation5], 4294966912 }
 0x1e7   :  { %259 = vsyncpa [#allocation4], 1 }
 0x1e8   :  { %260 = vsyncpa [#allocation7], 1 }
 0x1e9   :  { %261 = vsyncpa [#allocation5], 1 }

</bundles_post_ra>
